<compile_context>
chip_gen: v5e
topology: v5e:2x2
jax: 0.10.0
libtpu: 0.0.40
codegen_flags: <defaults>
</compile_context>

<pallas_src>
from functools import partial

import jax
import jax.numpy as jnp
from jax.experimental import pallas as pl
from jax.experimental.pallas import tpu as pltpu

LANE = 128


def _round_up(v, m):
    return (v + m - 1) // m * m


# ------------------------------ Pallas kernel -------------------------------

def _dwconv1d_kernel(x_ref, w1_ref, b1_ref, wd_ref, b2_ref, w3_ref, *rest,
                     l_pad, l_valid, has_shortcut_conv):
    """One row tile: x_ref (R, Cin_p) -> o_ref (R, Cout_p)."""
    if has_shortcut_conv:
        ws_ref, bo_ref, o_ref = rest
    else:
        bo_ref, o_ref = rest

    x = x_ref[...]                                             # (R, Cin_p)

    # conv1 (1x1) + folded BN1 + ReLU                           (MXU matmul #1)
    h = jnp.dot(x, w1_ref[...], preferred_element_type=jnp.float32)
    h = jnp.maximum(h + b1_ref[...], 0.0)                      # (R, Cc_p) f32

    # depthwise conv k=3, pad=1, stride=1 + folded BN2.
    # +/-1 row shifts run on the XLU (pltpu.roll); zero padding at each
    # sequence boundary comes from in-kernel 0/1 masks built from an iota
    # (cheap VPU work, no extra DMA streams, no padded buffer / relayout).
    rows = h.shape[0]
    pos = jax.lax.broadcasted_iota(jnp.int32, (rows, 1), 0) % l_pad
    mprev = (pos != 0).astype(jnp.float32)                     # row has a left
    mnext = (pos != (l_valid - 1)).astype(jnp.float32)         # row has a right
    h_prev = pltpu.roll(h, 1, 0) * mprev                       # h[r-1]
    h_next = pltpu.roll(h, rows - 1, 0) * mnext                # h[r+1] (roll -1)
    wd = wd_ref[...]                                           # (3, Cc_p) f32
    y = (h_prev * wd[0:1, :] + h * wd[1:2, :] + h_next * wd[2:3, :]
         + b2_ref[...])

    # conv3 + folded BN3, plus the shortcut:
    #   * conv shortcut: second accumulating MXU dot (no concat copy).
    #   * identity shortcut: lane-aligned f32 VPU add (Cin_p == Cout_p).
    z = jnp.dot(y.astype(w3_ref.dtype), w3_ref[...],
                preferred_element_type=jnp.float32)            # MXU matmul #2
    if has_shortcut_conv:
        z = z + jnp.dot(x, ws_ref[...], preferred_element_type=jnp.float32)
    else:
        z = z + x.astype(jnp.float32)
    o_ref[...] = jnp.maximum(z + bo_ref[...], 0.0).astype(o_ref.dtype)


# --------------------------------- wrapper ----------------------------------

def _fold_bn(bn, eps=1e-5):
    scale = bn["gamma"] / jnp.sqrt(bn["var"] + eps)
    shift = bn["beta"] - bn["mean"] * scale
    return scale, shift


def dwconv1d_forward(x_ncl, p, *, stride=1, compute_dtype=jnp.bfloat16,
                     target_rows=2048):
    """x_ncl: (N, C_in, L) f32 -> (N, C_out, L_out) f32, L_out = ceil(L/stride)."""
    N, c_in, L = x_ncl.shape
    c_conv = p["w1"].shape[0]
    c_out = p["w3"].shape[0]
    has_sc = bool(p["has_shortcut_conv"])

    # ---- fold BatchNorms into conv weights / biases (one-time tiny XLA ops) --
    s1, b1 = _fold_bn(p["bn1"])
    s2, b2 = _fold_bn(p["bn2"])
    s3, b3 = _fold_bn(p["bn3"])
    w1f = p["w1"].T * s1[None, :]                      # (Cin, Cc)
    wdf = p["wd"].T * s2[None, :]                      # (3, Cc)
    w3f = p["w3"].T * s3[None, :]                      # (Cc, Cout)
    if has_sc:
        ss, bs = _fold_bn(p["bns"])
        wsf = p["ws"].T * ss[None, :]                  # (Cin, Cout)
        b_out = b3 + bs
    else:                                              # identity shortcut
        b_out = b3

    # ---- pad channel dims to lane width (128): lane-dense vregs / MXU -------
    cin_p = _round_up(c_in, LANE)
    cc_p = _round_up(c_conv, LANE)
    cout_p = _round_up(c_out, LANE)
    w1_p = jnp.zeros((cin_p, cc_p), jnp.float32).at[:c_in, :c_conv].set(w1f)
    wd_p = jnp.zeros((3, cc_p), jnp.float32).at[:, :c_conv].set(wdf)
    b1_p = jnp.zeros((1, cc_p), jnp.float32).at[0, :c_conv].set(b1)
    b2_p = jnp.zeros((1, cc_p), jnp.float32).at[0, :c_conv].set(b2)
    w3_p = jnp.zeros((cc_p, cout_p), jnp.float32).at[:c_conv, :c_out].set(w3f)
    bo_p = jnp.zeros((1, cout_p), jnp.float32).at[0, :c_out].set(b_out)
    if has_sc:
        ws_p = jnp.zeros((cin_p, cout_p), jnp.float32).at[:c_in, :c_out].set(wsf)

    # ---- row tiling: whole sequences per tile, deep "parallel" grid ---------
    itemsize = jnp.dtype(compute_dtype).itemsize
    l_pad = _round_up(L, 8)                            # sublane alignment
    # TODO(synk): tile very long sequences along L across grid steps (1-row
    # halo) instead of forcing rows_tile = l_pad when l_pad > target_rows.
    per_row_bytes = (2 * cin_p * itemsize              # double-buffered x tile
                     + 2 * cout_p * itemsize           # double-buffered out tile
                     + 5 * cc_p * 4 + cout_p * 4)      # f32 temporaries
    weight_bytes = (2 * itemsize * (cin_p * cc_p + cc_p * cout_p
                                    + (cin_p * cout_p if has_sc else 0))
                    + 4 * (4 * cc_p + cout_p))
    vmem_budget = 28 * 1024 * 1024                     # safe on 64 MiB v7x
    rows_cap = max(l_pad, (vmem_budget - weight_bytes) // per_row_bytes)
    seqs_per_tile = max(1, min(N, min(target_rows, rows_cap) // l_pad))
    if N >= 2:                                         # v7x megacore: >=2 steps
        seqs_per_tile = min(seqs_per_tile, -(-N // 2))
    n_pad = _round_up(N, seqs_per_tile)
    rows_tile = seqs_per_tile * l_pad
    rows_total = n_pad * l_pad
    n_tiles = n_pad // seqs_per_tile

    # ---- NCL -> channels-last rows, padded + cast in one fused expression ---
    # TODO(synk): in a channels-last surrounding model this transpose/pad and
    # the final transpose disappear entirely.
    x_flat = (jnp.zeros((n_pad, l_pad, cin_p), compute_dtype)
              .at[:N, :L, :c_in]
              .set(jnp.transpose(x_ncl, (0, 2, 1)).astype(compute_dtype))
              .reshape(rows_total, cin_p))

    w1_c = w1_p.astype(compute_dtype)
    w3_c = w3_p.astype(compute_dtype)

    kernel = partial(_dwconv1d_kernel, l_pad=l_pad, l_valid=L,
                     has_shortcut_conv=has_sc)

    const = lambda shape: pl.BlockSpec(shape, lambda t: (0, 0))
    in_specs = [
        pl.BlockSpec((rows_tile, cin_p), lambda t: (t, 0)),   # x rows
        const((cin_p, cc_p)),                                 # w1 * s1
        const((1, cc_p)),                                     # b1
        const((3, cc_p)),                                     # depthwise * s2
        const((1, cc_p)),                                     # b2
        const((cc_p, cout_p)),                                # w3 * s3
    ]
    args = [x_flat, w1_c, b1_p, wd_p, b2_p, w3_c]
    if has_sc:
        in_specs.append(const((cin_p, cout_p)))               # ws * ss
        args.append(ws_p.astype(compute_dtype))
    in_specs.append(const((1, cout_p)))                       # b3 (+ bs)
    args.append(bo_p)

    mm_flops = cin_p * cc_p + cc_p * cout_p + (cin_p * cout_p if has_sc else 0)
    cost = pl.CostEstimate(
        flops=2 * rows_total * mm_flops + 8 * rows_total * cc_p,
        transcendentals=0,
        bytes_accessed=rows_total * (cin_p + cout_p) * itemsize
                       + weight_bytes // 2)

    vmem_est = weight_bytes + rows_tile * per_row_bytes
    vmem_limit = int(min(max(2 * vmem_est, 16 * 1024 * 1024),
                         48 * 1024 * 1024))

    out_flat = pl.pallas_call(
        kernel,
        out_shape=jax.ShapeDtypeStruct((rows_total, cout_p), compute_dtype),
        grid=(n_tiles,),
        in_specs=in_specs,
        out_specs=pl.BlockSpec((rows_tile, cout_p), lambda t: (t, 0)),
        compiler_params=pltpu.CompilerParams(
            dimension_semantics=("parallel",),
            vmem_limit_bytes=vmem_limit),
        cost_estimate=cost,
    )(*args)

    # un-pad, apply the conv3/shortcut stride outside the kernel, back to NCL.
    # TODO(synk): for stride > 1, compute matmul #2 / the store only on strided
    # rows inside the kernel and emit an already-strided output block.
    out = out_flat.reshape(n_pad, l_pad, cout_p)[:N, 0:L:stride, :c_out]
    return jnp.transpose(out, (0, 2, 1)).astype(jnp.float32)  # (N, C_out, L_out)


# -------------------------- parameter construction --------------------------

def make_params(key, c_in, c_out, *, stride=1, reduction=1):
    """Synthetic PyTorch-style parameters (conv weights + BatchNorm stats)."""
    c_conv = int((1.0 / float(reduction)) * c_out)
    ks = jax.random.split(key, 8)

    def bn(k, c):
        k0, k1, k2, k3 = jax.random.split(k, 4)
        return dict(gamma=jax.random.uniform(k0, (c,), minval=0.5, maxval=1.5),
                    beta=0.1 * jax.random.normal(k1, (c,)),
                    mean=0.1 * jax.random.normal(k2, (c,)),
                    var=jax.random.uniform(k3, (c,), minval=0.5, maxval=1.5))

    p = dict(
        w1=0.3 * jax.random.normal(ks[0], (c_conv, c_in)),    # Conv1D k=1
        wd=0.3 * jax.random.normal(ks[1], (c_conv, 3)),       # depthwise k=3
        w3=0.3 * jax.random.normal(ks[2], (c_out, c_conv)),   # Conv1D k=1
        bn1=bn(ks[3], c_conv), bn2=bn(ks[4], c_conv), bn3=bn(ks[5], c_out),
        has_shortcut_conv=(stride != 1 or c_in != c_out),
    )
    if p["has_shortcut_conv"]:
        p["ws"] = 0.3 * jax.random.normal(ks[6], (c_out, c_in))
        p["bns"] = bn(ks[7], c_out)
    return p


# ---------------------------- pure-JAX reference ----------------------------

def _bn_ref(h_ncl, bn, eps=1e-5):
    scale = bn["gamma"] / jnp.sqrt(bn["var"] + eps)
    shift = bn["beta"] - bn["mean"] * scale
    return h_ncl * scale[None, :, None] + shift[None, :, None]


def reference_forward(x_ncl, p, *, stride=1):
    """Mirror of PyTorch DWConv1D.forward (f32, NCL layout, inference BN)."""
    x = x_ncl.astype(jnp.float32)
    h = jax.nn.relu(_bn_ref(jnp.einsum("ncl,dc->ndl", x, p["w1"]), p["bn1"]))
    hp = jnp.pad(h, ((0, 0), (0, 0), (1, 1)))
    y = (hp[:, :, :-2] * p["wd"][None, :, 0:1]
         + hp[:, :, 1:-1] * p["wd"][None, :, 1:2]
         + hp[:, :, 2:] * p["wd"][None, :, 2:3])
    y = _bn_ref(y, p["bn2"])
    z = _bn_ref(jnp.einsum("ncl,dc->ndl", y[:, :, ::stride], p["w3"]), p["bn3"])
    if p["has_shortcut_conv"]:
        sc = _bn_ref(jnp.einsum("ncl,dc->ndl", x[:, :, ::stride], p["ws"]),
                     p["bns"])
    else:
        sc = x
    return jax.nn.relu(z + sc)


# ------------------------------------ main -----------------------------------

if __name__ == "__main__":
    key = jax.random.PRNGKey(0)
    configs = [
        # (N, C_in, C_out, L, stride, compute dtype, tolerance)
        (2, 8, 16, 16, 1, jnp.float32, 1e-3),    # conv shortcut (Cin != Cout)
        (2, 8, 16, 16, 1, jnp.bfloat16, 5e-2),   # bf16 MXU operands + output
        (2, 16, 16, 16, 1, jnp.float32, 1e-3),   # identity shortcut (VPU add)
        (2, 8, 16, 16, 2, jnp.float32, 1e-3),    # strided conv3 + shortcut
    ]
    for i, (N, c_in, c_out, L, stride, cdt, tol) in enumerate(configs):
        kx, kp = jax.random.split(jax.random.fold_in(key, i))
        x = jax.random.normal(kx, (N, c_in, L), dtype=jnp.float32)  # NCL
        params = make_params(kp, c_in, c_out, stride=stride)

        out = jax.block_until_ready(
            dwconv1d_forward(x, params, stride=stride, compute_dtype=cdt))
        ref = reference_forward(x, params, stride=stride)

        l_out = (L - 1) // stride + 1
        assert out.shape == (N, c_out, l_out), (out.shape, (N, c_out, l_out))
        assert jnp.allclose(out, ref, rtol=tol, atol=tol), (
            i, float(jnp.max(jnp.abs(out - ref))))

    print("KERNEL_OK")
</pallas_src>

<mosaic_0001>
module attributes {stable_mosaic.version = 11 : i64} {
  func.func @_dwconv1d_kernel(%arg0: i32, %arg1: memref<16x128xf32, #tpu.memory_space<vmem>>, %arg2: memref<128x128xf32, #tpu.memory_space<vmem>>, %arg3: memref<1x128xf32, #tpu.memory_space<vmem>>, %arg4: memref<3x128xf32, #tpu.memory_space<vmem>>, %arg5: memref<1x128xf32, #tpu.memory_space<vmem>>, %arg6: memref<128x128xf32, #tpu.memory_space<vmem>>, %arg7: memref<128x128xf32, #tpu.memory_space<vmem>>, %arg8: memref<1x128xf32, #tpu.memory_space<vmem>>, %arg9: memref<16x128xf32, #tpu.memory_space<vmem>>) attributes {dimension_semantics = [#tpu.dimension_semantics<parallel>], iteration_bounds = array<i64: 2>, scalar_prefetch = 0 : i64, scratch_operands = 0 : i64, tpu.core_type = #tpu.core_type<tc>, window_params = [{transform_indices = @transform_0, window_bounds = array<i64: 16, 128>}, {pipeline_mode = #tpu.pipeline_mode<synchronous>, transform_indices = @transform_1, window_bounds = array<i64: 128, 128>}, {pipeline_mode = #tpu.pipeline_mode<synchronous>, transform_indices = @transform_2, window_bounds = array<i64: 1, 128>}, {pipeline_mode = #tpu.pipeline_mode<synchronous>, transform_indices = @transform_3, window_bounds = array<i64: 3, 128>}, {pipeline_mode = #tpu.pipeline_mode<synchronous>, transform_indices = @transform_4, window_bounds = array<i64: 1, 128>}, {pipeline_mode = #tpu.pipeline_mode<synchronous>, transform_indices = @transform_5, window_bounds = array<i64: 128, 128>}, {pipeline_mode = #tpu.pipeline_mode<synchronous>, transform_indices = @transform_6, window_bounds = array<i64: 128, 128>}, {pipeline_mode = #tpu.pipeline_mode<synchronous>, transform_indices = @transform_7, window_bounds = array<i64: 1, 128>}, {transform_indices = @transform_8, window_bounds = array<i64: 16, 128>}]} {
    %c0 = arith.constant 0 : index
    %c0_0 = arith.constant 0 : index
    %0 = vector.load %arg1[%c0, %c0_0] : memref<16x128xf32, #tpu.memory_space<vmem>>, vector<16x128xf32>
    %c0_1 = arith.constant 0 : index
    %c0_2 = arith.constant 0 : index
    %1 = vector.load %arg2[%c0_1, %c0_2] : memref<128x128xf32, #tpu.memory_space<vmem>>, vector<128x128xf32>
    %cst = arith.constant dense<0.000000e+00> : vector<16x128xf32>
    %2 = tpu.matmul %0, %1, %cst {dimension_numbers = #tpu.dot_dimension_numbers<[1], [0], [0], [1], [0, 0, 1, 1], [], []>} : vector<16x128xf32>, vector<128x128xf32>, vector<16x128xf32> -> vector<16x128xf32>
    %c0_3 = arith.constant 0 : index
    %c0_4 = arith.constant 0 : index
    %3 = vector.load %arg3[%c0_3, %c0_4] : memref<1x128xf32, #tpu.memory_space<vmem>>, vector<1x128xf32>
    %4 = vector.broadcast %3 : vector<1x128xf32> to vector<16x128xf32>
    %5 = arith.addf %2, %4 : vector<16x128xf32>
    %cst_5 = arith.constant 0.000000e+00 : f32
    %6 = vector.broadcast %cst_5 : f32 to vector<16x128xf32>
    %7 = arith.maximumf %5, %6 : vector<16x128xf32>
    %8 = tpu.iota {dimensions = array<i32: 0>} : vector<16x1xi32>
    %c16_i32 = arith.constant 16 : i32
    %c0_i32 = arith.constant 0 : i32
    %9 = arith.cmpi eq, %c16_i32, %c0_i32 : i32
    %c1_i32 = arith.constant 1 : i32
    %10 = arith.select %9, %c1_i32, %c16_i32 : i32
    %11 = vector.broadcast %10 : i32 to vector<16x1xi32>
    %12 = arith.remsi %8, %11 : vector<16x1xi32>
    %c0_i32_6 = arith.constant 0 : i32
    %13 = vector.broadcast %c0_i32_6 : i32 to vector<16x1xi32>
    %14 = arith.cmpi ne, %12, %13 : vector<16x1xi32>
    %c0_i32_7 = arith.constant 0 : i32
    %15 = vector.broadcast %c0_i32_7 : i32 to vector<16x1xi32>
    %16 = arith.cmpi slt, %12, %15 : vector<16x1xi32>
    %c0_i32_8 = arith.constant 0 : i32
    %17 = arith.cmpi slt, %10, %c0_i32_8 : i32
    %18 = vector.broadcast %17 : i1 to vector<16x1xi1>
    %19 = vector.broadcast %18 : vector<16x1xi1> to vector<16x1xi1>
    %20 = arith.xori %16, %19 : vector<16x1xi1>
    %21 = arith.andi %20, %14 : vector<16x1xi1>
    %22 = vector.broadcast %10 : i32 to vector<16x1xi32>
    %23 = arith.addi %12, %22 : vector<16x1xi32>
    %24 = arith.select %21, %23, %12 : vector<16x1xi1>, vector<16x1xi32>
    %c0_i32_9 = arith.constant 0 : i32
    %25 = vector.broadcast %c0_i32_9 : i32 to vector<16x1xi32>
    %26 = arith.cmpi ne, %24, %25 : vector<16x1xi32>
    %27 = arith.extui %26 : vector<16x1xi1> to vector<16x1xi32>
    %28 = arith.sitofp %27 : vector<16x1xi32> to vector<16x1xf32>
    %c15_i32 = arith.constant 15 : i32
    %29 = vector.broadcast %c15_i32 : i32 to vector<16x1xi32>
    %30 = arith.cmpi ne, %24, %29 : vector<16x1xi32>
    %31 = arith.extui %30 : vector<16x1xi1> to vector<16x1xi32>
    %32 = arith.sitofp %31 : vector<16x1xi32> to vector<16x1xf32>
    %c1_i32_10 = arith.constant 1 : i32
    %33 = tpu.dynamic_rotate %7 by %c1_i32_10 dim 0 : vector<16x128xf32>, i32 -> vector<16x128xf32>
    %34 = vector.broadcast %28 : vector<16x1xf32> to vector<16x128xf32>
    %35 = arith.mulf %33, %34 : vector<16x128xf32>
    %c15_i32_11 = arith.constant 15 : i32
    %36 = tpu.dynamic_rotate %7 by %c15_i32_11 dim 0 : vector<16x128xf32>, i32 -> vector<16x128xf32>
    %37 = vector.broadcast %32 : vector<16x1xf32> to vector<16x128xf32>
    %38 = arith.mulf %36, %37 : vector<16x128xf32>
    %c0_12 = arith.constant 0 : index
    %c0_13 = arith.constant 0 : index
    %39 = vector.load %arg4[%c0_12, %c0_13] : memref<3x128xf32, #tpu.memory_space<vmem>>, vector<3x128xf32>
    %40 = vector.extract_strided_slice %39 {offsets = [0, 0], sizes = [1, 128], strides = [1, 1]} : vector<3x128xf32> to vector<1x128xf32>
    %41 = vector.broadcast %40 : vector<1x128xf32> to vector<16x128xf32>
    %42 = arith.mulf %35, %41 : vector<16x128xf32>
    %43 = vector.extract_strided_slice %39 {offsets = [1, 0], sizes = [1, 128], strides = [1, 1]} : vector<3x128xf32> to vector<1x128xf32>
    %44 = vector.broadcast %43 : vector<1x128xf32> to vector<16x128xf32>
    %45 = arith.mulf %7, %44 : vector<16x128xf32>
    %46 = arith.addf %42, %45 : vector<16x128xf32>
    %47 = vector.extract_strided_slice %39 {offsets = [2, 0], sizes = [1, 128], strides = [1, 1]} : vector<3x128xf32> to vector<1x128xf32>
    %48 = vector.broadcast %47 : vector<1x128xf32> to vector<16x128xf32>
    %49 = arith.mulf %38, %48 : vector<16x128xf32>
    %50 = arith.addf %46, %49 : vector<16x128xf32>
    %c0_14 = arith.constant 0 : index
    %c0_15 = arith.constant 0 : index
    %51 = vector.load %arg5[%c0_14, %c0_15] : memref<1x128xf32, #tpu.memory_space<vmem>>, vector<1x128xf32>
    %52 = vector.broadcast %51 : vector<1x128xf32> to vector<16x128xf32>
    %53 = arith.addf %50, %52 : vector<16x128xf32>
    %c0_16 = arith.constant 0 : index
    %c0_17 = arith.constant 0 : index
    %54 = vector.load %arg6[%c0_16, %c0_17] : memref<128x128xf32, #tpu.memory_space<vmem>>, vector<128x128xf32>
    %cst_18 = arith.constant dense<0.000000e+00> : vector<16x128xf32>
    %55 = tpu.matmul %53, %54, %cst_18 {dimension_numbers = #tpu.dot_dimension_numbers<[1], [0], [0], [1], [0, 0, 1, 1], [], []>} : vector<16x128xf32>, vector<128x128xf32>, vector<16x128xf32> -> vector<16x128xf32>
    %c0_19 = arith.constant 0 : index
    %c0_20 = arith.constant 0 : index
    %56 = vector.load %arg7[%c0_19, %c0_20] : memref<128x128xf32, #tpu.memory_space<vmem>>, vector<128x128xf32>
    %cst_21 = arith.constant dense<0.000000e+00> : vector<16x128xf32>
    %57 = tpu.matmul %0, %56, %cst_21 {dimension_numbers = #tpu.dot_dimension_numbers<[1], [0], [0], [1], [0, 0, 1, 1], [], []>} : vector<16x128xf32>, vector<128x128xf32>, vector<16x128xf32> -> vector<16x128xf32>
    %58 = arith.addf %55, %57 : vector<16x128xf32>
    %c0_22 = arith.constant 0 : index
    %c0_23 = arith.constant 0 : index
    %59 = vector.load %arg8[%c0_22, %c0_23] : memref<1x128xf32, #tpu.memory_space<vmem>>, vector<1x128xf32>
    %60 = vector.broadcast %59 : vector<1x128xf32> to vector<16x128xf32>
    %61 = arith.addf %58, %60 : vector<16x128xf32>
    %cst_24 = arith.constant 0.000000e+00 : f32
    %62 = vector.broadcast %cst_24 : f32 to vector<16x128xf32>
    %63 = arith.maximumf %61, %62 : vector<16x128xf32>
    %c0_25 = arith.constant 0 : index
    %c0_26 = arith.constant 0 : index
    %64 = vector.load %arg9[%c0_25, %c0_26] : memref<16x128xf32, #tpu.memory_space<vmem>>, vector<16x128xf32>
    tpu.vector_store %arg9[%c0_25, %c0_26], %63 {strides = array<i32>} : memref<16x128xf32, #tpu.memory_space<vmem>>, vector<16x128xf32>,
    return
  }
  func.func @transform_0(%arg0: i32) -> (i32, i32) {
    %c0_i32 = arith.constant 0 : i32
    %c0_i32_0 = arith.constant 0 : i32
    return %arg0, %c0_i32 : i32, i32
  }
  func.func @transform_1(%arg0: i32) -> (i32, i32) {
    %c0_i32 = arith.constant 0 : i32
    %c0_i32_0 = arith.constant 0 : i32
    %c0_i32_1 = arith.constant 0 : i32
    return %c0_i32, %c0_i32_0 : i32, i32
  }
  func.func @transform_2(%arg0: i32) -> (i32, i32) {
    %c0_i32 = arith.constant 0 : i32
    %c0_i32_0 = arith.constant 0 : i32
    %c0_i32_1 = arith.constant 0 : i32
    return %c0_i32, %c0_i32_0 : i32, i32
  }
  func.func @transform_3(%arg0: i32) -> (i32, i32) {
    %c0_i32 = arith.constant 0 : i32
    %c0_i32_0 = arith.constant 0 : i32
    %c0_i32_1 = arith.constant 0 : i32
    return %c0_i32, %c0_i32_0 : i32, i32
  }
  func.func @transform_4(%arg0: i32) -> (i32, i32) {
    %c0_i32 = arith.constant 0 : i32
    %c0_i32_0 = arith.constant 0 : i32
    %c0_i32_1 = arith.constant 0 : i32
    return %c0_i32, %c0_i32_0 : i32, i32
  }
  func.func @transform_5(%arg0: i32) -> (i32, i32) {
    %c0_i32 = arith.constant 0 : i32
    %c0_i32_0 = arith.constant 0 : i32
    %c0_i32_1 = arith.constant 0 : i32
    return %c0_i32, %c0_i32_0 : i32, i32
  }
  func.func @transform_6(%arg0: i32) -> (i32, i32) {
    %c0_i32 = arith.constant 0 : i32
    %c0_i32_0 = arith.constant 0 : i32
    %c0_i32_1 = arith.constant 0 : i32
    return %c0_i32, %c0_i32_0 : i32, i32
  }
  func.func @transform_7(%arg0: i32) -> (i32, i32) {
    %c0_i32 = arith.constant 0 : i32
    %c0_i32_0 = arith.constant 0 : i32
    %c0_i32_1 = arith.constant 0 : i32
    return %c0_i32, %c0_i32_0 : i32, i32
  }
  func.func @transform_8(%arg0: i32) -> (i32, i32) {
    %c0_i32 = arith.constant 0 : i32
    %c0_i32_0 = arith.constant 0 : i32
    return %arg0, %c0_i32 : i32, i32
  }
}

</mosaic_0001>

<bundles_post_ra>
// kernel: tpu_custom_call.1
= control target key start
LH: loop header
LB: loop body
LE: loop exit
PB: predicated region body
PF: predicated region fallthrough
CT: control target
= control target key end

     0   :  { %s1336_s0 = inlined_call_operand.hbm [shape: f32[32,128], index: 0, kind: input, shape index: {}]   ;;  %s1337_s1 = inlined_call_operand.hbm [shape: f32[128,128], index: 1, kind: input, shape index: {}]   ;;  %s1338_s2 = inlined_call_operand.vmem [shape: f32[1,128], index: 2, kind: input, shape index: {}]   ;;  %s1339_s3 = inlined_call_operand.hbm [shape: f32[3,128], index: 3, kind: input, shape index: {}]   ;;  %s1340_s4 = inlined_call_operand.vmem [shape: f32[1,128], index: 4, kind: input, shape index: {}]   ;;  %s1341_s5 = inlined_call_operand.hbm [shape: f32[128,128], index: 5, kind: input, shape index: {}]   ;;  %s1342_s6 = inlined_call_operand.hbm [shape: f32[128,128], index: 6, kind: input, shape index: {}]   ;;  %s1343_s7 = inlined_call_operand.vmem [shape: f32[1,128], index: 7, kind: input, shape index: {}]   ;;  %s1344_s8 = inlined_call_operand.hbm [shape: f32[32,128], index: 8, kind: output, shape index: {}]  }
   0x1   :  { %1347 = sst [smem:[#allocation16_spill]] %s1337_s1 }
   0x2   :  { %1348 = sst [smem:[#allocation17_spill]] %s1339_s3 }
   0x3   :  { %13 = vsyncpa [#allocation3], 0 }
   0x4   :  { %15 = vsyncpa [#allocation3 + $0x1], 0 }
   0x5   :  { %16 = vsyncpa [#allocation6], 0 }
   0x6   :  { %17 = vsyncpa [#allocation9], 0 }
   0x7   :  { %18 = vsyncpa [#allocation4], 0 }
   0x8   :  { %20 = vsyncpa [#allocation4 + $0x1], 0  ;;  %s1144_s27 = smov 0   ;;  %s1146_s28 = smov 0  }
   0x9   :  { %s1148_s29 = smov 0   ;;  %s1150_s30 = smov 0  }
   0xa LB: > { %s1165_s9 = sadd.s32 4294967295, %s1088_s30   ;;  %s727_s10 = sadd.s32 4294967294, %s1088_s30   ;;  %s1088_s30 = sphi %s1150_s30, %s1363_s30   ;;  %s1084_s29 = sphi %s1148_s29, %s1362_s29   ;;  %s1080_s28 = sphi %s1146_s28, %s1361_s28   ;;  %s1076_s27 = sphi %s1144_s27, %s1360_s27  }
   0xb   : > { %p46_p0 = scmp.ne.s32.totalorder %s1080_s28, %s1076_s27  ;;  %p47_p1 = scmp.eq.s32.totalorder %s1165_s9, 0 }
   0xc   : > { %p217_p2 = scmp.eq.s32.totalorder %s1165_s9, 1  ;;  %p223_p3 = scmp.eq.s32.totalorder %s727_s10, 1 }
   0xd   : > { %p1174_p4 = por %p47_p1, %p46_p0  ;;  %p728_p5 = scmp.ge.s32.totalorder %s1088_s30, 1 }
   0xe   : > { %p1179_p6 = por %p223_p3, %p46_p0  ;;  %p230_p7 = scmp.lt.s32.totalorder %s1088_s30, 3 }
   0xf   : > { %s1351_s1 = sld [smem:[#allocation16_spill]]  ;;  %s1090_s17 = smov [#allocation5]  }
  0x10   : > { %p1187_p8 = pnand %p728_p5, %p230_p7  ;;  %s243_s18 = sshll.u32 %s1090_s17, 4  ;;  %s244_s18 = int_to_ptr.vmem [resolvable:$true] %s243_s18 }
  0x11   : > { %s273_s22 = sshll.u32 %s1341_s5, 4  ;;  %s1345_s23 = smov 128   ;;  %s274_s22 = int_to_ptr.hbm [resolvable:$true] %s273_s22 }
  0x12   : > { %p789_p9 = pneg %p1187_p8  ;;  %s1346_s24 = smov 8  }
  0x13   : > { %s1093_s25 = smov [#allocation8]   ;;  %s1354_s3 = sld [smem:[#allocation17_spill]] }
  0x14   : > { %p1195_p10 = pnand %p789_p9, %p47_p1  ;;  %s275_s26 = sshll.u32 %s1093_s25, 4  ;;  %s276_s26 = int_to_ptr.vmem [resolvable:$true] %s275_s26 }
  0x15   : > { %s241_s15 = sshll.u32 %s1351_s1, 4  ;;  %s1094_s20 = smov [#allocation7]   ;;  %s242_s15 = int_to_ptr.hbm [resolvable:$true] %s241_s15 }
  0x16   : > { %792 = dma.hbm_to_vmem [thread:$0]  (!%p1195_p10), %s242_s15, 2048, %s244_s18, [#allocation6], %s1345_s23, %s1345_s23, %s1346_s24  }
  0x17   : > { %798 = dma.hbm_to_vmem [thread:$0]  (!%p1195_p10), %s274_s22, 2048, %s276_s26, [#allocation9], %s1345_s23, %s1345_s23, %s1346_s24  }
  0x18   : > { %s287_s18 = sshll.u32 %s1342_s6, 4  ;;  %s261_s21 = sshll.u32 %s1094_s20, 4  ;;  %s288_s18 = int_to_ptr.hbm [resolvable:$true] %s287_s18  ;;  %s262_s21 = int_to_ptr.vmem [resolvable:$true] %s261_s21 }
  0x19   : > { %s259_s14 = sshll.u32 %s1354_s3, 4  ;;  %s1095_s25 = smov [#allocation10]   ;;  %s260_s14 = int_to_ptr.hbm [resolvable:$true] %s259_s14 }
  0x1a   : > { %795 = dma.hbm_to_vmem [thread:$0]  (!%p1195_p10), %s260_s14, 64, %s262_s21, [#allocation6]  }
  0x1b   : > { %s289_s10 = sshll.u32 %s1095_s25, 4  ;;  %s1227_s22 = sadd.s32 1, %s1088_s30   ;;  %s290_s10 = int_to_ptr.vmem [resolvable:$true] %s289_s10 }
  0x1c   : > { %801 = dma.hbm_to_vmem [thread:$0]  (!%p1195_p10), %s288_s18, 2048, %s290_s10, [#allocation9], %s1345_s23, %s1345_s23, %s1346_s24  }
  0x1d   : > { %s33_s26 = sadd.s32 1, %s1084_s29  ;;  %s30_s13 = ssub.s32 %s1088_s30, %s1227_s22 }
  0x1e   : > { %p40_p12 = scmp.ne.s32.totalorder %s1084_s29, %s1080_s28  ;;  %p31_p13 = scmp.eq.s32.totalorder %s30_s13, 0 }
  0x1f   : > { %p41_p0 = scmp.eq.s32.totalorder %s1088_s30, 0  ;;  %p814_p5 = scmp.lt.s32.totalorder %s1088_s30, 2 }
  0x20   : > { %p1237_p3 = por %p217_p2, %p40_p12  ;;  %s306_s19 = sand.u32 1, %s1084_s29  }
  0x21   : > { %s1243_s15 = scalar_select %p31_p13, %s1084_s29, %s33_s26  }
  0x22   : > { %p42_p7 = por %p41_p0, %p40_p12  ;;  %s734_s17 = sshll.u32 %s306_s19, 4 }
  0x23   : > { %s751_s18 = sshll.u32 %s1088_s30, 4  ;;  %s310_s10 = scalar_lea.vmem [#allocation2], %s734_s17 }
  0x24   : > { %s315_s25 = scalar_lea.hbm %s1336_s0, %s751_s18  ;;  %s318_s23 = sshll.u32 %s310_s10, 4  ;;  %s319_s23 = int_to_ptr.vmem [resolvable:$true] %s318_s23 }
  0x25   : > { %s316_s13 = sshll.u32 %s315_s25, 4  ;;  %p1250_p2 = pnand %p814_p5, %p42_p7  ;;  %s317_s13 = int_to_ptr.hbm [resolvable:$true] %s316_s13 }
  0x26   : > { %s307_s26 = scalar_lea.sflag [#allocation3], %s306_s19  ;;  %s984_s1 = sshra.s32 %s317_s13, 4  ;;  %s985_s1 = int_to_ptr.hbm [resolvable:$true] %s984_s1 }
  0x27   : > { %s986_s3 = scalar_lea.hbm %s985_s1, 16  ;;  %p988_p10 = pneg %p1250_p2 }
  0x28   : > { %p987_p9 = scmp.ne.s32.totalorder %s985_s1, %s986_s3  ;;  %s991_s20 = scalar_lea.hbm %s1336_s0, 32 }
  0x29   : > { %p992_p0 = scmp.lt.s32.totalorder %s985_s1, %s1336_s0  ;;  %p993_p5 = scmp.lt.s32.totalorder %s991_s20, %s986_s3 }
  0x2a   : > { %p989_p12 = pnand %p988_p10, %p987_p9 }
  0x2b   : > { %p994_p7 = por %p993_p5, %p992_p0 }
  0x2c   : > { %p990_p13 = pneg %p989_p12 }
  0x2e   : > { %p995_p11 = pnand %p994_p7, %p990_p13 }
  0x30   : > { %998 = shalt.err (!%p995_p11)
}
  0x31   : > { %s1357_s19 = smov 8   ;;  %s1358_s10 = smov 128  }
  0x32   : > { %805 = dma.hbm_to_vmem [thread:$0]  (!%p1250_p2), %s317_s13, 256, %s319_s23, %s307_s26, %s1358_s10, %s1358_s10, %s1357_s19  }
  0x33   : > { %330 = sbr.rel (%p1187_p8) target bundleno = 392 (0x188), region = 52  ;;  %s1270_s18 = sand.u32 (!%p1187_p8), 1, %s1080_s28  }
  0x34   : > { %s738_s1 = sshll.u32 (!%p1187_p8), %s1270_s18, 4  ;;  %s333_s3 = scalar_lea.sflag (!%p1187_p8), [#allocation3], %s1270_s18 }
  0x35   : > { %s1276_s17 = scalar_lea.vmem (!%p1187_p8), [#allocation2], %s738_s1 }
  0x38   : > { %1059 = dma.done.wait (%p1174_p4), %s333_s3, 256  }
  0x39   : > { %1061 = vsyncadd (%p1174_p4), %s333_s3, 4294967040 }
  0x3a   : > { %1063 = dma.done.wait (%p47_p1), [#allocation6], 2112  }
  0x3b   : > { %1065 = vsyncadd (%p47_p1), [#allocation6], 4294965184 }
  0x3c   : > { %1067 = dma.done.wait (%p47_p1), [#allocation9], 4096  }
  0x3d   : > { %1069 = vsyncadd (%p47_p1), [#allocation9], 4294963200  ;;  %v409_v0 = vld [vmem:[#allocation5 + $0x78] sm:$0xff]  ;;  %v408_v1 = vld [vmem:[#allocation5 + $0x70] sm:$0xff]  ;;  %v439_v50 = vlaneseq  ;;  %s752_s20 = sshll.u32 %s1165_s9, 4  ;;  %s389_s10 = scalar_lea.vmem [#allocation11], %s738_s1 }
  0x3e   : > { %753 = vmatpush.msra.mxu3 %v409_v0  ;;  %414 = vmatpush.msra.mxu0 %v409_v0  ;;  %v407_v2 = vld [vmem:[#allocation5 + $0x68] sm:$0xff]  ;;  %v406_v3 = vld [vmem:[#allocation5 + $0x60] sm:$0xff]  ;;  %v405_v4 = vld [vmem:[#allocation5 + $0x58] sm:$0xff]  ;;  %s612_s19 = scalar_lea.hbm %s1344_s8, %s752_s20  ;;  %s613_s3 = sshll.u32 %s389_s10, 4  ;;  %s614_s3 = int_to_ptr.vmem [resolvable:$true] %s613_s3 }
  0x3f   : > { %v527_v5 = vld [vmem:[#allocation8 + $0x78] sm:$0xff]  ;;  %v526_v6 = vld [vmem:[#allocation8 + $0x70] sm:$0xff]  ;;  %v525_v10 = vld [vmem:[#allocation8 + $0x68] sm:$0xff]  ;;  %v440_v53 = vshrl.u32 %v439_v50, 7  ;;  %s601_s9 = scalar_lea.sflag [#allocation4], %s1270_s18  ;;  %s1034_s24 = scalar_lea.hbm %s1344_s8, 32 }
  0x40   : > { %754 = vmatpush.msra.mxu3 %v408_v1  ;;  %415 = vmatpush.msra.mxu0 %v408_v1  ;;  %v543_v7 = vld [vmem:[#allocation10 + $0x78] sm:$0xff]  ;;  %v542_v8 = vld [vmem:[#allocation10 + $0x70] sm:$0xff]  ;;  %v541_v11 = vld [vmem:[#allocation10 + $0x68] sm:$0xff] }
  0x41   : > { %v404_v9 = vld [vmem:[#allocation5 + $0x50] sm:$0xff]  ;;  %567 = vmatpush.msra.mxu2 %v527_v5  ;;  %544 = vmatpush.msra.mxu1 %v543_v7  ;;  %v403_v12 = vld [vmem:[#allocation5 + $0x48] sm:$0xff]  ;;  %v402_v15 = vld [vmem:[#allocation5 + $0x40] sm:$0xff]  ;;  %v446_v55 = vand.u32 15, %v440_v53  ;;  %v441_v56 = vadd.s32 8, %v440_v53  ;;  %vm480_vm1 = vcmp.lt.s32.totalorder %v440_v53, 1 }
  0x42   : > { %755 = vmatpush.msra.mxu3 %v407_v2  ;;  %416 = vmatpush.msra.mxu0 %v407_v2  ;;  %v524_v13 = vld [vmem:[#allocation8 + $0x60] sm:$0xff]  ;;  %v523_v16 = vld [vmem:[#allocation8 + $0x58] sm:$0xff]  ;;  %v522_v18 = vld [vmem:[#allocation8 + $0x50] sm:$0xff]  ;;  %vm487_vm2 = vcmp.lt.s32.totalorder %v440_v53, 7 }
  0x43   : > { %568 = vmatpush.msra.mxu2 %v526_v6  ;;  %545 = vmatpush.msra.mxu1 %v542_v8  ;;  %v540_v14 = vld [vmem:[#allocation10 + $0x60] sm:$0xff]  ;;  %v401_v17 = vld [vmem:[#allocation5 + $0x38] sm:$0xff]  ;;  %v400_v19 = vld [vmem:[#allocation5 + $0x30] sm:$0xff]  ;;  %vm466_vm0 = vcmp.ne.s32.totalorder %v446_v55, 0  ;;  %v453_v60 = vand.u32 15, %v441_v56 }
  0x44   : > { %756 = vmatpush.msra.mxu3 %v406_v3  ;;  %417 = vmatpush.msra.mxu0 %v406_v3  ;;  %v521_v20 = vld [vmem:[#allocation8 + $0x48] sm:$0xff]  ;;  %v398_v22 = vld [vmem:[#allocation5 + $0x20] sm:$0xff]  ;;  %v397_v23 = vld [vmem:[#allocation5 + $0x18] sm:$0xff]  ;;  %v1096_v3 = vmov 0.0  }
  0x45   : > { %569 = vmatpush.msra.mxu2 %v525_v10  ;;  %546 = vmatpush.msra.mxu1 %v541_v11  ;;  %v399_v21 = vld [vmem:[#allocation5 + $0x28] sm:$0xff]  ;;  %v396_v24 = vld [vmem:[#allocation5 + $0x10] sm:$0xff]  ;;  %v394_v26 = vld [vmem:[#allocation5] sm:$0xff]  ;;  %vm473_vm3 = vcmp.ne.s32.totalorder %v453_v60, 15 }
  0x46   : > { %757 = vmatpush.msra.mxu3 %v405_v4  ;;  %418 = vmatpush.msra.mxu0 %v405_v4  ;;  %v395_v25 = vld [vmem:[#allocation5 + $0x8] sm:$0xff]  ;;  %v392_v28 = vld [vmem:[%s1276_s17] sm:$0xff]  ;;  %v744_v4 = vsel %vm466_vm0, 1.0, %v1096_v3  ;;  %v745_v11 = vsel %vm473_vm3, 1.0, %v1096_v3 }
  0x47   : > { %570 = vmatpush.msra.mxu2 %v524_v13  ;;  %547 = vmatpush.msra.mxu1 %v540_v14  ;;  %v393_v27 = vld [vmem:[%s1276_s17 + $0x8] sm:$0xff]  ;;  %v861_v51 = vld [vmem:[%s1338_s2] ss:$0 sm:$0xff]  ;;  %s615_s17 = sshll.u32 %s612_s19, 4  ;;  %s616_s17 = int_to_ptr.hbm [resolvable:$true] %s615_s17 }
  0x48   : > { %758 = vmatpush.msra.mxu3 %v404_v9  ;;  %419 = vmatpush.msra.mxu0 %v404_v9  ;;  %v539_v29 = vld [vmem:[#allocation10 + $0x58] sm:$0xff]  ;;  %v520_v30 = vld [vmem:[#allocation8 + $0x40] sm:$0xff]  ;;  %v538_v31 = vld [vmem:[#allocation10 + $0x50] sm:$0xff]  ;;  %s1028_s11 = sshra.s32 %s616_s17, 4  ;;  %s1029_s11 = int_to_ptr.hbm [resolvable:$true] %s1028_s11 }
  0x49   : > { %571 = vmatpush.msra.mxu2 %v523_v16  ;;  %548 = vmatpush.msra.mxu1 %v539_v29  ;;  %v519_v32 = vld [vmem:[#allocation8 + $0x38] sm:$0xff]  ;;  %v537_v33 = vld [vmem:[#allocation10 + $0x48] sm:$0xff]  ;;  %v518_v34 = vld [vmem:[#allocation8 + $0x30] sm:$0xff]  ;;  %s1030_s16 = scalar_lea.hbm %s1029_s11, 16  ;;  %p1035_p11 = scmp.lt.s32.totalorder %s1029_s11, %s1344_s8 }
  0x4a   : > { %759 = vmatpush.msra.mxu3 %v403_v12  ;;  %420 = vmatpush.msra.mxu0 %v403_v12  ;;  %v536_v35 = vld [vmem:[#allocation10 + $0x40] sm:$0xff]  ;;  %v517_v36 = vld [vmem:[#allocation8 + $0x28] sm:$0xff]  ;;  %v535_v37 = vld [vmem:[#allocation10 + $0x38] sm:$0xff]  ;;  %p1031_p1 = scmp.ne.s32.totalorder %s1029_s11, %s1030_s16  ;;  %p1036_p2 = scmp.lt.s32.totalorder %s1034_s24, %s1030_s16 }
  0x4b   : > { %572 = vmatpush.msra.mxu2 %v522_v18  ;;  %549 = vmatpush.msra.mxu1 %v538_v31  ;;  %v516_v38 = vld [vmem:[#allocation8 + $0x20] sm:$0xff]  ;;  %v534_v39 = vld [vmem:[#allocation10 + $0x30] sm:$0xff]  ;;  %v515_v40 = vld [vmem:[#allocation8 + $0x18] sm:$0xff] }
  0x4c   : > { %760 = vmatpush.msra.mxu3 %v402_v15  ;;  %421 = vmatpush.msra.mxu0 %v402_v15  ;;  %v533_v41 = vld [vmem:[#allocation10 + $0x28] sm:$0xff]  ;;  %v514_v42 = vld [vmem:[#allocation8 + $0x10] sm:$0xff]  ;;  %v532_v43 = vld [vmem:[#allocation10 + $0x20] sm:$0xff]  ;;  %p1032_p4 = pnand %p1031_p1, %p1237_p3  ;;  %p1037_p9 = por %p1036_p2, %p1035_p11 }
  0x4d   : > { %573 = vmatpush.msra.mxu2 %v521_v20  ;;  %550 = vmatpush.msra.mxu1 %v537_v33  ;;  %v513_v44 = vld [vmem:[#allocation8 + $0x8] sm:$0xff]  ;;  %v531_v45 = vld [vmem:[#allocation10 + $0x18] sm:$0xff]  ;;  %v512_v46 = vld [vmem:[#allocation8] sm:$0xff] }
  0x4e   : > { %761 = vmatpush.msra.mxu3 %v401_v17  ;;  %422 = vmatpush.msra.mxu0 %v401_v17  ;;  %v530_v47 = vld [vmem:[#allocation10 + $0x10] sm:$0xff]  ;;  %v529_v48 = vld [vmem:[#allocation10 + $0x8] sm:$0xff]  ;;  %v528_v49 = vld [vmem:[#allocation10] sm:$0xff]  ;;  %p1033_p8 = pneg %p1032_p4 }
  0x4f   : > { %574 = vmatpush.msra.mxu2 %v520_v30  ;;  %551 = vmatpush.msra.mxu1 %v536_v35  ;;  %v492_v62 = vld [vmem:[#allocation7] sm:$0x7] }
  0x50   : > { %762 = vmatpush.msra.mxu3 %v400_v19  ;;  %423 = vmatpush.msra.mxu0 %v400_v19  ;;  %v496_v5 = vperm.slane %v492_v62, 1  ;;  %v493_v8 = vperm.slane %v492_v62, 0  ;;  %v501_v9 = vperm.slane %v492_v62, 2  ;;  %v863_v29 = vld [vmem:[%s1343_s7] ss:$0 sm:$0xff]  ;;  %p1038_p10 = pnand %p1037_p9, %p1033_p8 }
  0x51   : > { %575 = vmatpush.msra.mxu2 %v519_v32  ;;  %552 = vmatpush.msra.mxu1 %v535_v37 }
  0x52   : > { %763 = vmatpush.msra.mxu3 %v399_v21  ;;  %424 = vmatpush.msra.mxu0 %v399_v21 }
  0x53   : > { %576 = vmatpush.msra.mxu2 %v518_v34  ;;  %553 = vmatpush.msra.mxu1 %v534_v39 }
  0x54   : > { %764 = vmatpush.msra.mxu3 %v398_v22  ;;  %425 = vmatpush.msra.mxu0 %v398_v22  ;;  %v862_v22 = vld [vmem:[%s1340_s4] ss:$0 sm:$0xff] }
  0x55   : > { %577 = vmatpush.msra.mxu2 %v517_v36  ;;  %554 = vmatpush.msra.mxu1 %v533_v41 }
  0x56   : > { %765 = vmatpush.msra.mxu3 %v397_v23  ;;  %426 = vmatpush.msra.mxu0 %v397_v23 }
  0x57   : > { %578 = vmatpush.msra.mxu2 %v516_v38  ;;  %555 = vmatpush.msra.mxu1 %v532_v43 }
  0x58   : > { %766 = vmatpush.msra.mxu3 %v396_v24  ;;  %427 = vmatpush.msra.mxu0 %v396_v24 }
  0x59   : > { %579 = vmatpush.msra.mxu2 %v515_v40  ;;  %556 = vmatpush.msra.mxu1 %v531_v45 }
  0x5a   : > { %767 = vmatpush.msra.mxu3 %v395_v25  ;;  %428 = vmatpush.msra.mxu0 %v395_v25 }
  0x5b   : > { %580 = vmatpush.msra.mxu2 %v514_v42  ;;  %557 = vmatpush.msra.mxu1 %v530_v47 }
  0x5c   : > { %768 = vmatpush.msra.mxu3 %v394_v26  ;;  %429 = vmatpush.msra.mxu0 %v394_v26 }
  0x5d   : > { %433 = vmatmul.f32.vlgmr.msra.gmra.mxu3 %v393_v27  ;;  %430 = vmatmul.f32.vlgmr.msra.gmra.mxu0 %v392_v28 }
  0x5e   : > { %581 = vmatpush.msra.mxu2 %v513_v44  ;;  %558 = vmatpush.msra.mxu1 %v529_v48 }
  0x60   : > { %582 = vmatpush.msra.mxu2 %v512_v46  ;;  %559 = vmatpush.msra.mxu1 %v528_v49 }
  0x61   : > { %560 = vmatmul.f32.vlgmr.msra.gmra.mxu1 %v392_v28 }
  0x69   : > { %563 = vmatmul.f32.gmra.mxu1 %v393_v27 }
  0xda   : > { %v431_v52 = vpop.f32.mrf.mxu0 }
  0xdb   : > { %v432_v54 = vadd.f32 %v861_v51, %v431_v52 }
  0xdd   : > { %v437_v57 = vmax.f32 %v432_v54, 0.0 }
  0xde   : > { %v561_v28 = vpop.f32.mrf.mxu1 }
  0xdf   : > { %v478_v61 = vrot.slane %v437_v57, 7  ;;  %v485_v0 = vrot.slane %v437_v57, 1  ;;  %v497_v14 = vmul.f32 %v496_v5, %v437_v57 }
  0xe0   : > { %v434_v58 = vpop.f32.mrf.mxu3 }
  0xe1   : > { %v435_v59 = vadd.f32 %v861_v51, %v434_v58 }
  0xe3   : > { %v438_v63 = vmax.f32 %v435_v59, 0.0 }
  0xe5   : > { %v479_v1 = vrot.slane %v438_v63, 7  ;;  %v486_v2 = vrot.slane %v438_v63, 1  ;;  %v498_v20 = vmul.f32 %v496_v5, %v438_v63 }
  0xe6   : > { %v564_v34 = vpop.f32.mrf.mxu1 }
  0xe7   : > { %v482_v6 = vsel %vm480_vm1, %v479_v1, %v478_v61  ;;  %v488_v10 = vsel %vm487_vm2, %v485_v0, %v486_v2  ;;  %v481_v12 = vsel %vm480_vm1, %v478_v61, %v479_v1  ;;  %v489_v13 = vsel %vm487_vm2, %v486_v2, %v485_v0 }
  0xe8   : > { %v483_v7 = vmul.f32 %v744_v4, %v482_v6  ;;  %v502_v17 = vmul.f32 %v501_v9, %v488_v10  ;;  %v491_v18 = vmul.f32 %v745_v11, %v489_v13  ;;  %v495_v19 = vmul.f32 %v493_v8, %v481_v12 }
  0xea   : > { %v494_v15 = vmul.f32 %v493_v8, %v483_v7  ;;  %v500_v24 = vadd.f32 %v498_v20, %v495_v19  ;;  %v503_v25 = vmul.f32 %v501_v9, %v491_v18 }
  0xec   : > { %v499_v16 = vadd.f32 %v497_v14, %v494_v15  ;;  %v505_v26 = vadd.f32 %v503_v25, %v500_v24 }
  0xee   : > { %v504_v21 = vadd.f32 %v502_v17, %v499_v16  ;;  %v511_v27 = vadd.f32 %v862_v22, %v505_v26 }
  0xf0   : > { %v510_v23 = vadd.f32 %v862_v22, %v504_v21 }
  0xf2   : > { %583 = vmatmul.f32.vlgmr.msra.gmra.mxu2 %v510_v23 }
  0xfa   : > { %586 = vmatmul.f32.gmra.mxu2 %v511_v27 }
 0x175   : > { %v584_v30 = vpop.f32.mrf.mxu2 }
 0x176   : > { %v585_v31 = vadd.f32 %v584_v30, %v561_v28 }
 0x178   : > { %v594_v32 = vadd.f32 %v863_v29, %v585_v31 }
 0x17a   : > { %v596_v33 = vmax.f32 %v594_v32, 0.0 }
 0x17c   : > { %598 = vst [vmem:[%s389_s10] sm:$0xff] %v596_v33 }
 0x17d   : > { %v587_v35 = vpop.f32.mrf.mxu2 }
 0x17e   : > { %v588_v36 = vadd.f32 %v587_v35, %v564_v34 }
 0x180   : > { %v595_v37 = vadd.f32 %v863_v29, %v588_v36 }
 0x182   : > { %v597_v38 = vmax.f32 %v595_v37, 0.0 }
 0x184   : > { %599 = vst [vmem:[%s389_s10 + $0x8] sm:$0xff] %v597_v38 }
 0x185   : > { %1041 = shalt.err (!%p1038_p10)
}
 0x186   : > { %s1097_s18 = smov 128   ;;  %s1098_s20 = smov 8  }
 0x187   : > { %787 = dma.vmem_to_hbm [thread:$0]  (%p1237_p3), %s614_s3, 256, %s616_s17, %s601_s9, %s1097_s18, %s1097_s18, %s1098_s20  }
 0x188 PF: > { %s630_s21 = sand.u32 1, %s1076_s27   ;;  %p1359_p12 = scmp.ge.s32.totalorder %s1088_s30, 2 }
 0x189   : > { %s631_s25 = scalar_lea.sflag [#allocation4], %s630_s21 }
 0x18a   : > { %p807_p13 = pnand %p1359_p12, %p1179_p6 }
 0x18c   : > { %p808_p0 = pneg %p807_p13 }
 0x18e   : > { %1071 = dma.done.wait (%p808_p0), %s631_s25, 256  }
 0x18f   : > { %1073 = vsyncadd (%p808_p0), %s631_s25, 4294967040  ;;  %p23_p5 = scmp.ge.s32.totalorder %s1227_s22, 4   ;;  %s1360_s27 = smov %s1080_s28 }
 0x190   : > { %s1361_s28 = smov %s1084_s29  ;;  %s1362_s29 = smov %s1243_s15 }
 0x191   : > { %s1363_s30 = smov %s1227_s22  ;;  %25 = sbr.rel (!%p23_p5) target bundleno = 10 (0xa), region = 113 }
 0x196   :  { %637 = vsyncpa [#allocation3], 1 }
 0x197   :  { %639 = vsyncpa [#allocation3 + $0x1], 1 }
 0x198   :  { %640 = vsyncpa [#allocation6], 1 }
 0x199   :  { %641 = vsyncpa [#allocation9], 1 }
 0x19a   :  { %642 = vsyncpa [#allocation4], 1 }
 0x19b   :  { %644 = vsyncpa [#allocation4 + $0x1], 1 }

</bundles_post_ra>
